<compile_context>
chip_gen: v7x
topology: tpu7x:2x2x1
jax: 0.10.0
libtpu: 0.0.40
codegen_flags: <defaults>
</compile_context>

<pallas_src>
import math

import jax
import jax.numpy as jnp
from jax.experimental import pallas as pl
from jax.experimental.pallas import tpu as pltpu


def _round_up(x: int, m: int) -> int:
    return (x + m - 1) // m * m


def _sublane(dtype) -> int:
    """Sublane alignment for the second-to-last block dim of this dtype."""
    return {4: 8, 2: 16, 1: 32}.get(jnp.dtype(dtype).itemsize, 8)


def _choose_tile(dim: int, align: int, max_tile: int):
    """Largest t <= max_tile with t % align == 0 and dim % t == 0, else None."""
    if dim <= 0 or max_tile < align or dim % align != 0:
        return None
    units = dim // align
    best = None
    d = 1
    while d * align <= max_tile and d <= units:
        if units % d == 0:
            best = d * align
        d += 1
    return best


# ---------------------------------------------------------------------------
# Generic tiled  out = lhs @ rhs + bias ; grid = (row tiles, k tiles), k last.
# ---------------------------------------------------------------------------


def _make_mm_kernel(nk: int, tk: int, rhs_resident: bool):
    """Returns (kernel, needs_acc_scratch)."""
    if nk == 1:
        # Single reduction step: write the output directly, no accumulator.
        def kernel(lhs_ref, rhs_ref, b_ref, o_ref):
            o_ref[...] = (
                jnp.dot(lhs_ref[...], rhs_ref[...],
                        preferred_element_type=jnp.float32) + b_ref[...]
            ).astype(o_ref.dtype)
        return kernel, False

    def kernel(lhs_ref, rhs_ref, b_ref, o_ref, acc_ref):
        k = pl.program_id(1)
        if rhs_resident:
            # rhs is fully resident in VMEM (DMA'd once per call, constant
            # block index); slice the current k-panel out of it.
            start = pl.multiple_of(k * tk, 128)
            rhs_blk = rhs_ref[pl.ds(start, tk), :]
        else:
            rhs_blk = rhs_ref[...]
        part = jnp.dot(lhs_ref[...], rhs_blk, preferred_element_type=jnp.float32)

        @pl.when(k == 0)
        def _():
            acc_ref[...] = part          # first step: assign (no zero pass)

        @pl.when(k > 0)
        def _():
            acc_ref[...] += part

        # Bias add + downcast only once, on the final reduction step.
        @pl.when(k == nk - 1)
        def _():
            o_ref[...] = (acc_ref[...] + b_ref[...]).astype(o_ref.dtype)

    return kernel, True


def _mm_bias(lhs, rhs, bias2d, *, tm, tk, out_dtype, rhs_resident_bytes,
             vmem_limit_bytes):
    m, kd = lhs.shape
    kd2, nn = rhs.shape
    assert kd == kd2 and m % tm == 0 and kd % tk == 0 and nn % 128 == 0
    n_rows, nk = m // tm, kd // tk

    rhs_bytes = kd * nn * rhs.dtype.itemsize
    rhs_resident = nk > 1 and rhs_bytes <= rhs_resident_bytes
    kernel, needs_acc = _make_mm_kernel(nk, tk, rhs_resident)

    if rhs_resident:
        rhs_spec = pl.BlockSpec((kd, nn), lambda i, k: (0, 0))   # DMA'd once
        rhs_reads = 1
    else:
        rhs_spec = pl.BlockSpec((tk, nn), lambda i, k: (k, 0))
        rhs_reads = 1 if nk == 1 else n_rows                     # re-streamed

    scratch = [pltpu.VMEM((tm, nn), jnp.float32)] if needs_acc else []

    cost = pl.CostEstimate(
        flops=2 * m * kd * nn,
        transcendentals=0,
        bytes_accessed=(m * kd * lhs.dtype.itemsize
                        + rhs_bytes * rhs_reads
                        + nn * 4
                        + m * nn * jnp.dtype(out_dtype).itemsize),
    )

    return pl.pallas_call(
        kernel,
        out_shape=jax.ShapeDtypeStruct((m, nn), out_dtype),
        grid_spec=pltpu.PrefetchScalarGridSpec(
            num_scalar_prefetch=0,
            grid=(n_rows, nk),
            in_specs=[
                pl.BlockSpec((tm, tk), lambda i, k: (i, k)),   # lhs tile
                rhs_spec,                                      # rhs panel
                pl.BlockSpec((1, nn), lambda i, k: (0, 0)),    # bias row
            ],
            out_specs=pl.BlockSpec((tm, nn), lambda i, k: (i, 0)),
            scratch_shapes=scratch,
        ),
        compiler_params=pltpu.CompilerParams(
            dimension_semantics=("parallel", "arbitrary"),
            vmem_limit_bytes=vmem_limit_bytes,
        ),
        cost_estimate=cost,
    )(lhs, rhs, bias2d)


# ---------------------------------------------------------------------------
# GCN layer: out = adj @ (x @ W) + bias
# ---------------------------------------------------------------------------


def gcn_layer(x, adj, weights, bias=None, *,
              max_tm=1024, max_tk=1024,
              sp_resident_bytes=8 << 20,        # v7x-safe (2 bufs => 16 MiB)
              vmem_limit_bytes=48 << 20):       # fits v7x 64 MiB physical VMEM
    """GCN forward pass.

    The compute/storage dtype follows adj.dtype, so the N^2 adjacency matrix is
    never cast or copied per call.  For the bf16 path, cast adj to bf16 once
    upstream and reuse it across layers/steps (amortized).
    """
    n, f_in = x.shape
    f_out = weights.shape[1]
    out_dtype = x.dtype
    cdt = jnp.dtype(adj.dtype)
    row_align = _sublane(cdt)                 # 8 for f32, 16 for bf16 tiles

    f_out_p = _round_up(f_out, 128)           # lane-dense output stores
    f_in_p = _round_up(f_in, 128)

    # ---- adj tiling plan: zero-copy fast path when N tiles cleanly ---------
    tm_cap = min(max_tm, max(row_align, n // 2))   # >=2 row tiles when possible
    tm = _choose_tile(n, row_align, tm_cap)
    tk = _choose_tile(n, 256, max_tk) or _choose_tile(n, 128, max_tk)
    if tm is None and n <= max_tm:
        tm = n                                     # block == full-dim escape
    if tk is None and n <= max_tk:
        tk = n

    if tm is not None and tk is not None:
        n_eff, adj_c = n, adj                      # adj streamed straight from HBM
    else:
        # Large ragged N: pad once (costs one extra HBM pass over adj).
        # TODO(synk): pre-pad adj upstream once per graph to avoid this pass.
        n_eff = _round_up(n, 256)
        tm = _choose_tile(n_eff, row_align, min(max_tm, n_eff // 2)) or 256
        tk = (_choose_tile(n_eff, 256, max_tk)
              or _choose_tile(n_eff, 128, max_tk) or 256)
        adj_c = jnp.zeros((n_eff, n_eff), cdt).at[:n, :n].set(adj)

    # ---- small operands: cast/pad is cheap (O(N*F), not O(N^2)) ------------
    if n_eff == n and f_in_p == f_in and x.dtype == cdt:
        x_c = x
    else:
        x_c = jnp.zeros((n_eff, f_in_p), cdt).at[:n, :f_in].set(x.astype(cdt))
    if f_in_p == f_in and f_out_p == f_out and weights.dtype == cdt:
        w_c = weights
    else:
        w_c = jnp.zeros((f_in_p, f_out_p), cdt).at[:f_in, :f_out].set(
            weights.astype(cdt))
    zero_b = jnp.zeros((1, f_out_p), jnp.float32)
    b_c = zero_b if bias is None else zero_b.at[0, :f_out].set(
        bias.astype(jnp.float32))

    # ---- stage 1: sp = x @ W (hoisted, computed once; f_in reduction tiled) -
    tk1 = _choose_tile(f_in_p, 256, 512) or _choose_tile(f_in_p, 128, 512)
    sp = _mm_bias(x_c, w_c, zero_b, tm=tm, tk=tk1, out_dtype=cdt,
                  rhs_resident_bytes=sp_resident_bytes,
                  vmem_limit_bytes=vmem_limit_bytes)

    # ---- stage 2: out = adj @ sp + bias (dominant, HBM-bound on adj) -------
    out_p = _mm_bias(adj_c, sp, b_c, tm=tm, tk=tk, out_dtype=out_dtype,
                     rhs_resident_bytes=sp_resident_bytes,
                     vmem_limit_bytes=vmem_limit_bytes)

    return out_p[:n, :f_out]


if __name__ == "__main__":
    # Small shapes consistent with the module: N nodes, in/out feature dims.
    N, IN_F, OUT_F = 8, 32, 16

    key = jax.random.PRNGKey(0)
    kx, kadj, kw, kb = jax.random.split(key, 4)

    # Deterministic init mirroring GCNLayer.init_weights:
    # uniform(-stdv, stdv) with stdv = 1/sqrt(out_features).
    stdv = 1.0 / math.sqrt(OUT_F)
    weights = jax.random.uniform(kw, (IN_F, OUT_F), jnp.float32,
                                 minval=-stdv, maxval=stdv)
    bias = jax.random.uniform(kb, (OUT_F,), jnp.float32,
                              minval=-stdv, maxval=stdv)
    x = jax.random.normal(kx, (N, IN_F), jnp.float32)
    adj = jax.random.uniform(kadj, (N, N), jnp.float32)

    hp = jax.lax.Precision.HIGHEST

    def ref_gcn(x_, adj_, w_, b_):
        return jnp.matmul(adj_, jnp.matmul(x_, w_, precision=hp),
                          precision=hp) + b_

    ref = ref_gcn(x, adj, weights, bias)

    # 1) f32 path, N=8: zero-copy adj, single full-dim block.
    out = jax.block_until_ready(gcn_layer(x, adj, weights, bias))
    assert out.shape == (N, OUT_F)
    assert jnp.allclose(out, ref, atol=1e-4, rtol=1e-4)

    # 2) bf16 path: adj is cast ONCE here (amortized upstream across layers /
    #    training steps); the wrapper never re-casts the N^2 matrix per call.
    adj_bf16 = adj.astype(jnp.bfloat16)
    out_bf16 = jax.block_until_ready(gcn_layer(x, adj_bf16, weights, bias))
    assert out_bf16.shape == (N, OUT_F)
    assert jnp.allclose(out_bf16, ref, atol=5e-2, rtol=5e-2)

    # 3) Tiled path: multi-step k reduction with VMEM-resident sp
    #    (small max tiles just to exercise the 2-D grid on a small problem).
    N2, IN2, OUT2 = 512, 96, 80
    k2 = jax.random.split(jax.random.PRNGKey(1), 4)
    stdv2 = 1.0 / math.sqrt(OUT2)
    w2 = jax.random.uniform(k2[0], (IN2, OUT2), jnp.float32,
                            minval=-stdv2, maxval=stdv2)
    b2 = jax.random.uniform(k2[1], (OUT2,), jnp.float32,
                            minval=-stdv2, maxval=stdv2)
    x2 = jax.random.normal(k2[2], (N2, IN2), jnp.float32)
    adj2 = jax.random.uniform(k2[3], (N2, N2), jnp.float32)
    ref2 = ref_gcn(x2, adj2, w2, b2)

    out2 = jax.block_until_ready(
        gcn_layer(x2, adj2, w2, b2, max_tm=128, max_tk=256))
    assert out2.shape == (N2, OUT2)
    assert jnp.allclose(out2, ref2, atol=1e-2, rtol=1e-2)

    # 4) Same problem, forcing the k-tiled (non-resident) sp stream.
    out2b = jax.block_until_ready(
        gcn_layer(x2, adj2, w2, b2, max_tm=128, max_tk=256,
                  sp_resident_bytes=0))
    assert jnp.allclose(out2b, ref2, atol=1e-2, rtol=1e-2)

    # 5) Ragged N that cannot tile cleanly -> padded fallback path.
    N3 = 1030
    k3 = jax.random.split(jax.random.PRNGKey(2), 2)
    x3 = jax.random.normal(k3[0], (N3, IN_F), jnp.float32)
    adj3 = jax.random.uniform(k3[1], (N3, N3), jnp.float32)
    ref3 = ref_gcn(x3, adj3, weights, bias)
    out3 = jax.block_until_ready(gcn_layer(x3, adj3, weights, bias))
    assert out3.shape == (N3, OUT_F)
    assert jnp.allclose(out3, ref3, atol=1e-2, rtol=1e-2)

    print("KERNEL_OK")
</pallas_src>

<mosaic_0001>
module attributes {stable_mosaic.version = 11 : i64} {
  func.func @kernel(%arg0: i32, %arg1: i32, %arg2: memref<8x128xf32, #tpu.memory_space<vmem>>, %arg3: memref<128x128xf32, #tpu.memory_space<vmem>>, %arg4: memref<1x128xf32, #tpu.memory_space<vmem>>, %arg5: memref<8x128xf32, #tpu.memory_space<vmem>>) attributes {dimension_semantics = [#tpu.dimension_semantics<parallel>, #tpu.dimension_semantics<arbitrary>], iteration_bounds = array<i64: 1, 1>, scalar_prefetch = 0 : i64, scratch_operands = 0 : i64, tpu.core_type = #tpu.core_type<tc>, window_params = [{transform_indices = @transform_0, window_bounds = array<i64: 8, 128>}, {transform_indices = @transform_1, window_bounds = array<i64: 128, 128>}, {pipeline_mode = #tpu.pipeline_mode<synchronous>, transform_indices = @transform_2, window_bounds = array<i64: 1, 128>}, {transform_indices = @transform_3, window_bounds = array<i64: 8, 128>}]} {
    %c0 = arith.constant 0 : index
    %c0_0 = arith.constant 0 : index
    %0 = vector.load %arg2[%c0, %c0_0] : memref<8x128xf32, #tpu.memory_space<vmem>>, vector<8x128xf32>
    %c0_1 = arith.constant 0 : index
    %c0_2 = arith.constant 0 : index
    %1 = vector.load %arg3[%c0_1, %c0_2] : memref<128x128xf32, #tpu.memory_space<vmem>>, vector<128x128xf32>
    %cst = arith.constant dense<0.000000e+00> : vector<8x128xf32>
    %2 = tpu.matmul %0, %1, %cst {dimension_numbers = #tpu.dot_dimension_numbers<[1], [0], [0], [1], [0, 0, 1, 1], [], []>} : vector<8x128xf32>, vector<128x128xf32>, vector<8x128xf32> -> vector<8x128xf32>
    %c0_3 = arith.constant 0 : index
    %c0_4 = arith.constant 0 : index
    %3 = vector.load %arg4[%c0_3, %c0_4] : memref<1x128xf32, #tpu.memory_space<vmem>>, vector<1x128xf32>
    %4 = vector.broadcast %3 : vector<1x128xf32> to vector<8x128xf32>
    %5 = arith.addf %2, %4 : vector<8x128xf32>
    %c0_5 = arith.constant 0 : index
    %c0_6 = arith.constant 0 : index
    %6 = vector.load %arg5[%c0_5, %c0_6] : memref<8x128xf32, #tpu.memory_space<vmem>>, vector<8x128xf32>
    tpu.vector_store %arg5[%c0_5, %c0_6], %5 {strides = array<i32>} : memref<8x128xf32, #tpu.memory_space<vmem>>, vector<8x128xf32>,
    return
  }
  func.func @transform_0(%arg0: i32, %arg1: i32) -> (i32, i32) {
    %c0_i32 = arith.constant 0 : i32
    return %arg0, %arg1 : i32, i32
  }
  func.func @transform_1(%arg0: i32, %arg1: i32) -> (i32, i32) {
    %c0_i32 = arith.constant 0 : i32
    %c0_i32_0 = arith.constant 0 : i32
    return %arg1, %c0_i32 : i32, i32
  }
  func.func @transform_2(%arg0: i32, %arg1: i32) -> (i32, i32) {
    %c0_i32 = arith.constant 0 : i32
    %c0_i32_0 = arith.constant 0 : i32
    %c0_i32_1 = arith.constant 0 : i32
    return %c0_i32, %c0_i32_0 : i32, i32
  }
  func.func @transform_3(%arg0: i32, %arg1: i32) -> (i32, i32) {
    %c0_i32 = arith.constant 0 : i32
    %c0_i32_0 = arith.constant 0 : i32
    return %arg0, %c0_i32 : i32, i32
  }
}

</mosaic_0001>

<bundles_post_ra>
// kernel: tpu_custom_call.1
= control target key start
LH: loop header
LB: loop body
LE: loop exit
PB: predicated region body
PF: predicated region fallthrough
CT: control target
= control target key end

     0   :  { %8 = vsyncpa [#allocation3], 0  ;;  %s383_s0 = inlined_call_operand.hbm [shape: f32[8,128], index: 0, kind: input, shape index: {}]   ;;  %s384_s1 = inlined_call_operand.hbm [shape: f32[128,128], index: 1, kind: input, shape index: {}]   ;;  %s385_s2 = inlined_call_operand.vmem [shape: f32[1,128], index: 2, kind: input, shape index: {}]   ;;  %s386_s3 = inlined_call_operand.hbm [shape: f32[8,128], index: 3, kind: output, shape index: {}]  }
   0x1   :  { %9 = vsyncpa [#allocation6], 0 }
   0x2   :  { %10 = vsyncpa [#allocation4], 0  ;;  %s309_s12 = smov [#allocation2]   ;;  %s310_s14 = smov [#allocation5]  }
   0x3   :  { %s17_s13 = sshll.u32 %s309_s12, 4  ;;  %s26_s15 = sshll.u32 %s310_s14, 4  ;;  %s18_s13 = int_to_ptr.vmem [resolvable:$true] %s17_s13  ;;  %s337_s15 = int_to_ptr.vmem [resolvable:$true] %s26_s15 }
   0x4   :  { %s237_s18 = scalar_lea.hbm %s383_s0, 128 }
   0x5   :  { %p238_p0 = scmp.ne.s32.totalorder %s383_s0, %s237_s18  ;;  %p241_p1 = scmp.lt.u32.totalorder %s237_s18, %s383_s0 }
   0x7   :  { %p243_p2 = pnand %p241_p1, %p238_p0 }
   0x9   :  { %246 = shalt.err (!%p243_p2)
}
   0xa   :  { %s247_s23 = scalar_lea.vmem %s18_s13, 128  ;;  %p252_p4 = scmp.lt.s32.totalorder %s18_s13, %s18_s13 }
   0xb   :  { %p248_p3 = scmp.ne.s32.totalorder %s18_s13, %s247_s23  ;;  %p253_p5 = scmp.lt.s32.totalorder %s247_s23, %s247_s23 }
   0xd   :  { %p254_p6 = por %p253_p5, %p252_p4 }
   0xf   :  { %p255_p7 = pnand %p254_p6, %p248_p3 }
  0x11   :  { %258 = shalt.err (!%p255_p7)
}
  0x12   :  { %20 = dma.hbm_to_vmem [thread:$0]  %s383_s0, 128, %s18_s13, [#allocation3]  }
  0x13   :  { %s259_s28 = scalar_lea.hbm %s384_s1, 2048 }
  0x14   :  { %p260_p8 = scmp.ne.s32.totalorder %s384_s1, %s259_s28  ;;  %p263_p9 = scmp.lt.u32.totalorder %s259_s28, %s384_s1 }
  0x16   :  { %p265_p10 = pnand %p263_p9, %p260_p8 }
  0x18   :  { %268 = shalt.err (!%p265_p10)
}
  0x19   :  { %s269_s6 = scalar_lea.vmem %s337_s15, 2048  ;;  %p274_p12 = scmp.lt.s32.totalorder %s337_s15, %s337_s15 }
  0x1a   :  { %p270_p11 = scmp.ne.s32.totalorder %s337_s15, %s269_s6  ;;  %p275_p13 = scmp.lt.s32.totalorder %s269_s6, %s269_s6 }
  0x1c   :  { %p276_p0 = por %p275_p13, %p274_p12 }
  0x1e   :  { %p277_p1 = pnand %p276_p0, %p270_p11 }
  0x20   :  { %280 = shalt.err (!%p277_p1)
}
  0x21   :  { %s311_s0 = smov 128   ;;  %s312_s7 = smov 8  }
  0x22   :  { %32 = dma.hbm_to_vmem [thread:$0]  %s384_s1, 2048, %s337_s15, [#allocation6], %s311_s0, %s311_s0, %s312_s7  }
  0x23   :  { %303 = dma.done.wait [#allocation3], 128  }
  0x24   :  { %304 = vsyncadd [#allocation3], 4294967168 }
  0x25   :  { %305 = dma.done.wait [#allocation6], 2048  }
  0x26   :  { %306 = vsyncadd [#allocation6], 4294965248  ;;  %v313_v0 = vmov 0.0|0.0   ;;  %vm314_vm0 = vmmov 0   ;;  %v315_v1 = vmov 0.0   ;;  %v42_v2 = vld [vmem:[#allocation5] sm:$0xff] }
  0x27   :  { %205 = vmatprep.subr.bf16.mxu0 %v313_v0  ;;  %202 = vmatprep.mubr.msk.f32.mxu0 %vm314_vm0, %v315_v1  ;;  %v43_v3 = vld [vmem:[#allocation5 + $0x8] sm:$0xff]  ;;  %v44_v4 = vld [vmem:[#allocation5 + $0x10] sm:$0xff]  ;;  %v45_v6 = vld [vmem:[#allocation5 + $0x18] sm:$0xff]  ;;  %s316_s11 = smov [#allocation7]  }
  0x28   :  { %v206_v5 = vpack.c.bf16 %v43_v3, %v42_v2  ;;  %v209_v7 = vpack.c.bf16 %v45_v6, %v44_v4  ;;  %v46_v8 = vld [vmem:[#allocation5 + $0x20] sm:$0xff]  ;;  %v47_v9 = vld [vmem:[#allocation5 + $0x28] sm:$0xff]  ;;  %v48_v11 = vld [vmem:[#allocation5 + $0x30] sm:$0xff]  ;;  %s142_s12 = sshll.u32 %s316_s11, 4  ;;  %s143_s12 = int_to_ptr.vmem [resolvable:$true] %s142_s12 }
  0x29   :  { %v212_v10 = vpack.c.bf16 %v47_v9, %v46_v8  ;;  %v49_v12 = vld [vmem:[#allocation5 + $0x38] sm:$0xff]  ;;  %v50_v14 = vld [vmem:[#allocation5 + $0x40] sm:$0xff]  ;;  %v51_v15 = vld [vmem:[#allocation5 + $0x48] sm:$0xff]  ;;  %s281_s13 = scalar_lea.vmem %s143_s12, 128  ;;  %p286_p3 = scmp.lt.s32.totalorder %s143_s12, %s143_s12 }
  0x2a   :  { %207 = vmatpush3.bf16.msra.mxu0 %v206_v5  ;;  %v215_v13 = vpack.c.bf16 %v49_v12, %v48_v11  ;;  %v218_v16 = vpack.c.bf16 %v51_v15, %v50_v14  ;;  %v52_v17 = vld [vmem:[#allocation5 + $0x50] sm:$0xff]  ;;  %v53_v18 = vld [vmem:[#allocation5 + $0x58] sm:$0xff]  ;;  %v54_v20 = vld [vmem:[#allocation5 + $0x60] sm:$0xff]  ;;  %p282_p2 = scmp.ne.s32.totalorder %s143_s12, %s281_s13  ;;  %p287_p4 = scmp.lt.s32.totalorder %s281_s13, %s281_s13 }
  0x2b   :  { %208 = vmatprep.subr.bf16.mxu0 %v313_v0  ;;  %v221_v19 = vpack.c.bf16 %v53_v18, %v52_v17  ;;  %v55_v21 = vld [vmem:[#allocation5 + $0x68] sm:$0xff]  ;;  %v56_v23 = vld [vmem:[#allocation5 + $0x70] sm:$0xff]  ;;  %v57_v24 = vld [vmem:[#allocation5 + $0x78] sm:$0xff] }
  0x2c   :  { %v224_v22 = vpack.c.bf16 %v55_v21, %v54_v20  ;;  %v227_v25 = vpack.c.bf16 %v57_v24, %v56_v23  ;;  %v41_v26 = vld [vmem:[#allocation2] sm:$0xff]  ;;  %p288_p5 = por %p287_p4, %p286_p3 }
  0x2d   :  { %v152_v27 = vld [vmem:[%s385_s2] ss:$0 sm:$0xff] }
  0x2e   :  { %210 = vmatpush3.bf16.msra.mxu0 %v209_v7  ;;  %p289_p6 = pnand %p288_p5, %p282_p2 }
  0x2f   :  { %211 = vmatprep.subr.bf16.mxu0 %v313_v0 }
  0x32   :  { %213 = vmatpush3.bf16.msra.mxu0 %v212_v10 }
  0x33   :  { %214 = vmatprep.subr.bf16.mxu0 %v313_v0 }
  0x36   :  { %216 = vmatpush3.bf16.msra.mxu0 %v215_v13 }
  0x37   :  { %217 = vmatprep.subr.bf16.mxu0 %v313_v0 }
  0x3a   :  { %219 = vmatpush3.bf16.msra.mxu0 %v218_v16 }
  0x3b   :  { %220 = vmatprep.subr.bf16.mxu0 %v313_v0 }
  0x3e   :  { %222 = vmatpush3.bf16.msra.mxu0 %v221_v19 }
  0x3f   :  { %223 = vmatprep.subr.bf16.mxu0 %v313_v0 }
  0x42   :  { %225 = vmatpush3.bf16.msra.mxu0 %v224_v22 }
  0x43   :  { %226 = vmatprep.subr.bf16.mxu0 %v313_v0 }
  0x46   :  { %228 = vmatpush3.bf16.msra.mxu0 %v227_v25 }
  0x49   :  { %203 = vmatmul.mubr.f32.vlgmr.msra.gmra.mrb[0].mxu0 %v41_v26 }
 0x11c   :  { %v131_v28 = vpop.f32.mrb[0].mxu0 }
 0x11d   :  { %v132_v29 = vadd.f32 %v152_v27, %v131_v28  ;;  %v204_v30 = vpop.f32.mrb[1].mxu0 }
 0x11f   :  { %135 = vst [vmem:[#allocation7] sm:$0xff] %v132_v29 }
 0x120   :  { %292 = shalt.err (!%p289_p6)
}
 0x121   :  { %s293_s16 = scalar_lea.hbm %s386_s3, 128 }
 0x122   :  { %p294_p7 = scmp.ne.s32.totalorder %s386_s3, %s293_s16  ;;  %p297_p8 = scmp.lt.u32.totalorder %s293_s16, %s386_s3 }
 0x124   :  { %p299_p9 = pnand %p297_p8, %p294_p7 }
 0x126   :  { %302 = shalt.err (!%p299_p9)
}
 0x127   :  { %145 = dma.vmem_to_hbm [thread:$0]  %s143_s12, 128, %s386_s3, [#allocation4]  }
 0x128   :  { %307 = dma.done.wait [#allocation4], 128  }
 0x129   :  { %308 = vsyncadd [#allocation4], 4294967168 }
 0x12a   :  { %149 = vsyncpa [#allocation3], 1 }
 0x12b   :  { %150 = vsyncpa [#allocation6], 1 }
 0x12c   :  { %151 = vsyncpa [#allocation4], 1 }

</bundles_post_ra>
